<compile_context>
chip_gen: v5e
topology: v5e:2x2
jax: 0.10.0
libtpu: 0.0.40
codegen_flags: <defaults>
</compile_context>

<pallas_src>
import functools

import jax
import jax.numpy as jnp
from jax.experimental import pallas as pl
from jax.experimental.pallas import tpu as pltpu

_LEAKY_SLOPE = 0.2


def _round_up(x: int, m: int) -> int:
    return (x + m - 1) // m * m


def _vmem_capacity_bytes() -> int:
    """Per-core VMEM capacity; conservative 64 MiB fallback (fits v5e..v7x)."""
    try:
        info = pltpu.get_tpu_info()
        cap = int(getattr(info, "vmem_capacity_bytes", 0) or 0)
        if cap > 0:
            return cap
    except Exception:
        pass
    return 64 * 1024 * 1024


def _select_tiles(n_rows, dm_pad, df128, csize, osize, budget, tm, tf, f32_out):
    """Pick (tm, tf): row tile and d_ff tile, fitting the VMEM budget.

    Weight HBM traffic is proportional to the number of row tiles, so tm is
    maximized first; tf only needs to keep the double-buffered weight tiles in
    VMEM.  When the whole (padded) expert fits, tf == df128 and the k loop
    disappears.
    """
    row_align = 16 if csize < 4 else 8          # bf16 packs 2 rows / sublane
    n_al = _round_up(max(n_rows, 1), row_align)

    def per_row_bytes(tf_):
        use_acc = (tf_ < df128) and (not f32_out)
        b = dm_pad * (2 * csize + 2 * osize)    # double-buffered x + out tiles
        if use_acc:
            b += dm_pad * 4                     # f32 accumulator scratch
        return b

    def weight_bytes(tf_):
        return 2 * 2 * dm_pad * tf_ * csize     # double-buffered wi + wo tiles

    def auto_tm(tf_):
        rem = budget - weight_bytes(tf_)
        per_row = per_row_bytes(tf_)
        if rem < per_row * row_align:
            return None
        t = min(rem // per_row // row_align * row_align, n_al, 2048)
        # Whole-expert-resident case: weights are DMA'd exactly once, so
        # splitting rows into >=2 tiles (v7x megacore sharding) is free.
        if tf_ == df128 and t >= n_al and n_al >= 2 * row_align:
            t = _round_up((n_al + 1) // 2, row_align)
        return t

    if tf is not None:
        tf = max(128, min(_round_up(tf, 128), df128))
    if tm is not None and tf is not None:
        return tm, tf

    tf_cands = ([tf] if tf is not None else
                [df128] + [t for t in (2048, 1024, 512, 256) if t < df128])
    best = None
    for tf_ in tf_cands:
        tm_ = tm if tm is not None else auto_tm(tf_)
        if tm_ is None:
            continue
        if tm is not None:
            total = weight_bytes(tf_) + tm_ * per_row_bytes(tf_)
            if total > budget:
                continue
        n_row_tiles = -(-n_al // tm_)
        key = (n_row_tiles, -tf_)               # fewest row tiles, then largest tf
        if best is None or key < best[0]:
            best = (key, tm_, tf_)
    if best is not None:
        return best[1], best[2]
    # Could not fit the budget: smallest reasonable tiles (the scoped-VMEM
    # limit still has ~10% headroom over the tile budget).
    return (tm if tm is not None else row_align,
            tf if tf is not None else min(256, df128))


def _ffn_tile(x, wi, wo):
    """act(x @ wi) @ wo with f32 accumulation.

    The f32 activation is deliberately downcast to the compute dtype before
    the second MXU pass.  Dropout(rate=0) is the identity.
    """
    h = jnp.dot(x, wi, preferred_element_type=jnp.float32)
    h = jnp.maximum(h, _LEAKY_SLOPE * h)        # LeakyReLU(0.2) on the VPU
    return jnp.dot(h.astype(x.dtype), wo, preferred_element_type=jnp.float32)


def _expert_kernel_fused(x_ref, wi_ref, wo_ref, o_ref):
    # Whole expert resident in VMEM: one pass per row tile, no reduction loop.
    o_ref[...] = _ffn_tile(x_ref[...], wi_ref[...], wo_ref[...]).astype(o_ref.dtype)


def _expert_kernel_acc_out(x_ref, wi_ref, wo_ref, o_ref):
    # d_ff tiled; o_ref is f32 and resident across the k axis -> accumulate
    # directly into it (saves tm*dm_pad*4 bytes of VMEM and a final copy).
    k = pl.program_id(1)

    @pl.when(k == 0)
    def _():
        o_ref[...] = jnp.zeros_like(o_ref)

    o_ref[...] += _ffn_tile(x_ref[...], wi_ref[...], wo_ref[...])


def _expert_kernel_acc_scratch(x_ref, wi_ref, wo_ref, o_ref, acc_ref):
    # d_ff tiled; non-f32 output -> accumulate in an f32 VMEM scratch.
    k = pl.program_id(1)

    @pl.when(k == 0)
    def _():
        acc_ref[...] = jnp.zeros_like(acc_ref)

    acc_ref[...] += _ffn_tile(x_ref[...], wi_ref[...], wo_ref[...])

    @pl.when(k == pl.num_programs(1) - 1)
    def _():
        o_ref[...] = acc_ref[...].astype(o_ref.dtype)


@functools.partial(jax.jit, static_argnames=("tm", "tf", "compute_dtype"))
def expert_layer(x, wi_t, wo_t, *, tm=None, tf=None, compute_dtype=None):
    """ExpertLayer forward.

    x: [..., d_model]; wi_t: [d_model, d_ff] (= Wi^T); wo_t: [d_ff, d_model]
    (= Wo^T).  tm/tf=None -> auto tile selection from the VMEM budget.
    """
    orig_shape = x.shape
    out_dtype = x.dtype
    d_model = orig_shape[-1]
    d_ff = wi_t.shape[1]

    if compute_dtype is None:
        # f32 x f32 MXU matmuls are multi-pass (~3-4x slower than bf16);
        # accumulation stays f32 so the accuracy loss is bounded.
        compute_dtype = jnp.bfloat16 if x.dtype == jnp.float32 else x.dtype
    compute_dtype = jnp.dtype(compute_dtype)
    csize = compute_dtype.itemsize
    osize = jnp.dtype(out_dtype).itemsize
    f32_out = jnp.dtype(out_dtype) == jnp.float32

    if tm is not None:
        row_align = 16 if csize < 4 else 8
        assert tm % row_align == 0, (
            f"row tile must be a multiple of {row_align} for {compute_dtype}")
    if tf is not None:
        assert tf % 128 == 0, "d_ff tile must be a multiple of 128 lanes"

    x2d = x.reshape(-1, d_model)
    n = x2d.shape[0]
    dm_pad = _round_up(d_model, 128)
    df128 = _round_up(d_ff, 128)

    vmem_cap = _vmem_capacity_bytes()
    tile_budget = int(0.75 * vmem_cap)                       # tiles + headroom
    vmem_limit = max(int(0.85 * vmem_cap), 32 * 1024 * 1024)

    tm, tf = _select_tiles(n, dm_pad, df128, csize, osize, tile_budget,
                           tm, tf, f32_out)

    n_pad = _round_up(max(n, 1), tm)
    df_pad = _round_up(d_ff, tf)
    num_k = df_pad // tf
    grid_rows = n_pad // tm

    # Cast / pad only when they are not no-ops (pre-cast / pre-pad weights for
    # inference so no per-call weight traffic is added outside the kernel).
    if x2d.dtype != compute_dtype:
        x2d = x2d.astype(compute_dtype)
    wi_c = wi_t if wi_t.dtype == compute_dtype else wi_t.astype(compute_dtype)
    wo_c = wo_t if wo_t.dtype == compute_dtype else wo_t.astype(compute_dtype)
    if n_pad != n or dm_pad != d_model:
        x2d = jnp.pad(x2d, ((0, n_pad - n), (0, dm_pad - d_model)))
    if dm_pad != d_model or df_pad != d_ff:
        wi_c = jnp.pad(wi_c, ((0, dm_pad - d_model), (0, df_pad - d_ff)))
        wo_c = jnp.pad(wo_c, ((0, df_pad - d_ff), (0, dm_pad - d_model)))

    # Real traffic: x once, weights once per row tile (once total if resident),
    # output once.
    weight_streams = 1 if num_k == 1 else grid_rows
    cost = pl.CostEstimate(
        flops=2 * 2 * n_pad * dm_pad * df_pad,
        transcendentals=0,
        bytes_accessed=(n_pad * dm_pad * csize
                        + weight_streams * 2 * dm_pad * df_pad * csize
                        + n_pad * dm_pad * osize),
    )

    if num_k == 1:
        # Whole expert resident: single fused pass, no accumulator.
        kernel = _expert_kernel_fused
        grid_spec = pltpu.PrefetchScalarGridSpec(
            num_scalar_prefetch=0,
            grid=(grid_rows,),
            in_specs=[
                pl.BlockSpec((tm, dm_pad), lambda i: (i, 0)),
                pl.BlockSpec((dm_pad, df_pad), lambda i: (0, 0)),
                pl.BlockSpec((df_pad, dm_pad), lambda i: (0, 0)),
            ],
            out_specs=pl.BlockSpec((tm, dm_pad), lambda i: (i, 0)),
            scratch_shapes=[],
        )
        dims = ("parallel",)
    else:
        kernel = _expert_kernel_acc_out if f32_out else _expert_kernel_acc_scratch
        grid_spec = pltpu.PrefetchScalarGridSpec(
            num_scalar_prefetch=0,
            grid=(grid_rows, num_k),
            in_specs=[
                pl.BlockSpec((tm, dm_pad), lambda i, k: (i, 0)),
                pl.BlockSpec((dm_pad, tf), lambda i, k: (0, k)),
                pl.BlockSpec((tf, dm_pad), lambda i, k: (k, 0)),
            ],
            out_specs=pl.BlockSpec((tm, dm_pad), lambda i, k: (i, 0)),
            scratch_shapes=([] if f32_out
                            else [pltpu.VMEM((tm, dm_pad), jnp.float32)]),
        )
        dims = ("parallel", "arbitrary")

    out = pl.pallas_call(
        kernel,
        out_shape=jax.ShapeDtypeStruct((n_pad, dm_pad), out_dtype),
        grid_spec=grid_spec,
        compiler_params=pltpu.CompilerParams(
            dimension_semantics=dims,
            vmem_limit_bytes=vmem_limit,
        ),
        cost_estimate=cost,
    )(x2d, wi_c, wo_c)

    if n_pad != n or dm_pad != d_model:
        out = out[:n, :d_model]
    return out.reshape(orig_shape)


if __name__ == "__main__":
    key = jax.random.PRNGKey(0)
    keys = jax.random.split(key, 9)

    # --- Test 1: f32 compute, whole expert resident, tight check ------------
    B, S, d_model, d_ff = 2, 8, 32, 64
    x = jax.random.normal(keys[0], (B, S, d_model), dtype=jnp.float32)
    wi_t = jax.random.normal(keys[1], (d_model, d_ff), dtype=jnp.float32) * 0.05
    wo_t = jax.random.normal(keys[2], (d_ff, d_model), dtype=jnp.float32) * 0.05

    y = jax.block_until_ready(expert_layer(x, wi_t, wo_t,
                                           compute_dtype=jnp.float32))
    h_ref = x @ wi_t
    h_ref = jnp.maximum(h_ref, _LEAKY_SLOPE * h_ref)
    y_ref = h_ref @ wo_t
    assert y.shape == (B, S, d_model) and y.dtype == jnp.float32
    assert jnp.allclose(y, y_ref, atol=1e-4, rtol=1e-4), "f32 mismatch"

    # --- Test 2: bf16 in/out, forced d_ff tiling (f32 scratch accumulator) --
    B2, S2, dm2, dff2 = 2, 64, 128, 256
    x2 = jax.random.normal(keys[3], (B2, S2, dm2), jnp.float32).astype(jnp.bfloat16)
    wi2 = (jax.random.normal(keys[4], (dm2, dff2), jnp.float32) * 0.05).astype(jnp.bfloat16)
    wo2 = (jax.random.normal(keys[5], (dff2, dm2), jnp.float32) * 0.05).astype(jnp.bfloat16)

    y2 = jax.block_until_ready(expert_layer(x2, wi2, wo2, tf=128))
    xf, wif, wof = (a.astype(jnp.float32) for a in (x2, wi2, wo2))
    h2 = xf @ wif
    h2 = jnp.maximum(h2, _LEAKY_SLOPE * h2)
    h2 = h2.astype(jnp.bfloat16).astype(jnp.float32)
    y2_ref = h2 @ wof
    assert y2.shape == (B2, S2, dm2) and y2.dtype == jnp.bfloat16
    assert jnp.allclose(y2.astype(jnp.float32), y2_ref, atol=3e-2, rtol=3e-2), \
        "bf16 mismatch"

    # --- Test 3: f32 in/out, default bf16 compute, d_ff tiled, direct o acc -
    B3, S3, dm3, dff3 = 2, 32, 64, 384
    x3 = jax.random.normal(keys[6], (B3, S3, dm3), dtype=jnp.float32)
    wi3 = jax.random.normal(keys[7], (dm3, dff3), dtype=jnp.float32) * 0.05
    wo3 = jax.random.normal(keys[8], (dff3, dm3), dtype=jnp.float32) * 0.05

    y3 = jax.block_until_ready(expert_layer(x3, wi3, wo3, tf=128))
    xb, wib, wob = (a.astype(jnp.bfloat16).astype(jnp.float32)
                    for a in (x3, wi3, wo3))
    h3 = xb @ wib
    h3 = jnp.maximum(h3, _LEAKY_SLOPE * h3)
    h3 = h3.astype(jnp.bfloat16).astype(jnp.float32)
    y3_ref = h3 @ wob
    assert y3.shape == (B3, S3, dm3) and y3.dtype == jnp.float32
    assert jnp.allclose(y3, y3_ref, atol=3e-2, rtol=3e-2), "mixed mismatch"

    print("KERNEL_OK")
</pallas_src>

<mosaic_0001>
module attributes {stable_mosaic.version = 11 : i64} {
  func.func @_expert_kernel_fused(%arg0: i32, %arg1: memref<8x128xf32, #tpu.memory_space<vmem>>, %arg2: memref<128x128xf32, #tpu.memory_space<vmem>>, %arg3: memref<128x128xf32, #tpu.memory_space<vmem>>, %arg4: memref<8x128xf32, #tpu.memory_space<vmem>>) attributes {dimension_semantics = [#tpu.dimension_semantics<parallel>], iteration_bounds = array<i64: 2>, scalar_prefetch = 0 : i64, scratch_operands = 0 : i64, tpu.core_type = #tpu.core_type<tc>, window_params = [{transform_indices = @transform_0, window_bounds = array<i64: 8, 128>}, {pipeline_mode = #tpu.pipeline_mode<synchronous>, transform_indices = @transform_1, window_bounds = array<i64: 128, 128>}, {pipeline_mode = #tpu.pipeline_mode<synchronous>, transform_indices = @transform_2, window_bounds = array<i64: 128, 128>}, {transform_indices = @transform_3, window_bounds = array<i64: 8, 128>}]} {
    %c0 = arith.constant 0 : index
    %c0_0 = arith.constant 0 : index
    %0 = vector.load %arg1[%c0, %c0_0] : memref<8x128xf32, #tpu.memory_space<vmem>>, vector<8x128xf32>
    %c0_1 = arith.constant 0 : index
    %c0_2 = arith.constant 0 : index
    %1 = vector.load %arg2[%c0_1, %c0_2] : memref<128x128xf32, #tpu.memory_space<vmem>>, vector<128x128xf32>
    %c0_3 = arith.constant 0 : index
    %c0_4 = arith.constant 0 : index
    %2 = vector.load %arg3[%c0_3, %c0_4] : memref<128x128xf32, #tpu.memory_space<vmem>>, vector<128x128xf32>
    %cst = arith.constant dense<0.000000e+00> : vector<8x128xf32>
    %3 = tpu.matmul %0, %1, %cst {dimension_numbers = #tpu.dot_dimension_numbers<[1], [0], [0], [1], [0, 0, 1, 1], [], []>} : vector<8x128xf32>, vector<128x128xf32>, vector<8x128xf32> -> vector<8x128xf32>
    %cst_5 = arith.constant 2.000000e-01 : f32
    %4 = vector.broadcast %cst_5 : f32 to vector<8x128xf32>
    %5 = arith.mulf %4, %3 : vector<8x128xf32>
    %6 = arith.maximumf %3, %5 : vector<8x128xf32>
    %cst_6 = arith.constant dense<0.000000e+00> : vector<8x128xf32>
    %7 = tpu.matmul %6, %2, %cst_6 {dimension_numbers = #tpu.dot_dimension_numbers<[1], [0], [0], [1], [0, 0, 1, 1], [], []>} : vector<8x128xf32>, vector<128x128xf32>, vector<8x128xf32> -> vector<8x128xf32>
    %c0_7 = arith.constant 0 : index
    %c0_8 = arith.constant 0 : index
    %8 = vector.load %arg4[%c0_7, %c0_8] : memref<8x128xf32, #tpu.memory_space<vmem>>, vector<8x128xf32>
    tpu.vector_store %arg4[%c0_7, %c0_8], %7 {strides = array<i32>} : memref<8x128xf32, #tpu.memory_space<vmem>>, vector<8x128xf32>,
    return
  }
  func.func @transform_0(%arg0: i32) -> (i32, i32) {
    %c0_i32 = arith.constant 0 : i32
    %c0_i32_0 = arith.constant 0 : i32
    return %arg0, %c0_i32 : i32, i32
  }
  func.func @transform_1(%arg0: i32) -> (i32, i32) {
    %c0_i32 = arith.constant 0 : i32
    %c0_i32_0 = arith.constant 0 : i32
    %c0_i32_1 = arith.constant 0 : i32
    return %c0_i32, %c0_i32_0 : i32, i32
  }
  func.func @transform_2(%arg0: i32) -> (i32, i32) {
    %c0_i32 = arith.constant 0 : i32
    %c0_i32_0 = arith.constant 0 : i32
    %c0_i32_1 = arith.constant 0 : i32
    return %c0_i32, %c0_i32_0 : i32, i32
  }
  func.func @transform_3(%arg0: i32) -> (i32, i32) {
    %c0_i32 = arith.constant 0 : i32
    %c0_i32_0 = arith.constant 0 : i32
    return %arg0, %c0_i32 : i32, i32
  }
}

</mosaic_0001>

<bundles_post_ra>
// kernel: expert_layer.1
= control target key start
LH: loop header
LB: loop body
LE: loop exit
PB: predicated region body
PF: predicated region fallthrough
CT: control target
= control target key end

     0   :  { %s340_s12 = smov 0   ;;  %s460_s0 = inlined_call_operand.vmem [shape: f32[16,128], index: 0, kind: input, shape index: {}]   ;;  %s461_s1 = inlined_call_operand.vmem [shape: f32[128,128], index: 1, kind: input, shape index: {}]   ;;  %s462_s2 = inlined_call_operand.vmem [shape: f32[128,128], index: 2, kind: input, shape index: {}]   ;;  %s463_s3 = inlined_call_operand.vmem [shape: f32[16,128], index: 3, kind: output, shape index: {}]  }
   0x1 LB: > { %s295_s13 = sadd.s32 4294967295, %s318_s12   ;;  %p299_p0 = scmp.ge.s32.totalorder %s318_s12, 1  ;;  %s318_s12 = sphi %s340_s12, %s13_s12  }
   0x2   : > { %p136_p1 = scmp.lt.s32.totalorder %s318_s12, 3 }
   0x4   : > { %p137_p2 = pnand %p299_p0, %p136_p1 }
   0x5   : > { %p158_p3 = scmp.lt.s32.totalorder (!%p137_p2), %s295_s13, 1 }
   0x6   : > { %140 = sbr.rel (%p137_p2) target bundleno = 300 (0x12c), region = 32 }
   0xb   : > { %v182_v0 = vld [vmem:[%s461_s1 + $0x78] sm:$0xff]  ;;  %v181_v1 = vld [vmem:[%s461_s1 + $0x70] sm:$0xff]  ;;  %v180_v2 = vld [vmem:[%s461_s1 + $0x68] sm:$0xff]  ;;  %s465_s13 = smov (!%p158_p3, %s295_s13), 1 }
   0xc   : > { %199 = vmatpush.msra.mxu0 %v182_v0  ;;  %v179_v3 = vld [vmem:[%s461_s1 + $0x60] sm:$0xff]  ;;  %v198_v4 = vld [vmem:[%s462_s2 + $0x78] sm:$0xff]  ;;  %v197_v5 = vld [vmem:[%s462_s2 + $0x70] sm:$0xff]  ;;  %s300_s8 = sshll.u32 %s465_s13, 3 }
   0xd   : > { %v178_v6 = vld [vmem:[%s461_s1 + $0x58] sm:$0xff]  ;;  %221 = vmatpush.msra.mxu1 %v198_v4  ;;  %v196_v7 = vld [vmem:[%s462_s2 + $0x68] sm:$0xff]  ;;  %v177_v8 = vld [vmem:[%s461_s1 + $0x50] sm:$0xff]  ;;  %s161_s20 = scalar_lea.vmem %s460_s0, %s300_s8  ;;  %s165_s6 = scalar_lea.vmem %s463_s3, %s300_s8 }
   0xe   : > { %200 = vmatpush.msra.mxu0 %v181_v1  ;;  %v195_v9 = vld [vmem:[%s462_s2 + $0x60] sm:$0xff]  ;;  %v176_v10 = vld [vmem:[%s461_s1 + $0x48] sm:$0xff]  ;;  %v194_v11 = vld [vmem:[%s462_s2 + $0x58] sm:$0xff] }
   0xf   : > { %222 = vmatpush.msra.mxu1 %v197_v5  ;;  %v175_v12 = vld [vmem:[%s461_s1 + $0x40] sm:$0xff]  ;;  %v193_v13 = vld [vmem:[%s462_s2 + $0x50] sm:$0xff]  ;;  %v174_v14 = vld [vmem:[%s461_s1 + $0x38] sm:$0xff] }
  0x10   : > { %201 = vmatpush.msra.mxu0 %v180_v2  ;;  %v192_v15 = vld [vmem:[%s462_s2 + $0x48] sm:$0xff]  ;;  %v173_v16 = vld [vmem:[%s461_s1 + $0x30] sm:$0xff]  ;;  %v191_v17 = vld [vmem:[%s462_s2 + $0x40] sm:$0xff] }
  0x11   : > { %223 = vmatpush.msra.mxu1 %v196_v7  ;;  %v172_v18 = vld [vmem:[%s461_s1 + $0x28] sm:$0xff]  ;;  %v190_v19 = vld [vmem:[%s462_s2 + $0x38] sm:$0xff]  ;;  %v171_v20 = vld [vmem:[%s461_s1 + $0x20] sm:$0xff] }
  0x12   : > { %202 = vmatpush.msra.mxu0 %v179_v3  ;;  %v189_v21 = vld [vmem:[%s462_s2 + $0x30] sm:$0xff]  ;;  %v170_v22 = vld [vmem:[%s461_s1 + $0x18] sm:$0xff]  ;;  %v188_v23 = vld [vmem:[%s462_s2 + $0x28] sm:$0xff] }
  0x13   : > { %224 = vmatpush.msra.mxu1 %v195_v9  ;;  %v169_v24 = vld [vmem:[%s461_s1 + $0x10] sm:$0xff]  ;;  %v187_v25 = vld [vmem:[%s462_s2 + $0x20] sm:$0xff]  ;;  %v168_v26 = vld [vmem:[%s461_s1 + $0x8] sm:$0xff] }
  0x14   : > { %203 = vmatpush.msra.mxu0 %v178_v6  ;;  %v186_v27 = vld [vmem:[%s462_s2 + $0x18] sm:$0xff]  ;;  %v167_v28 = vld [vmem:[%s461_s1] sm:$0xff]  ;;  %v185_v30 = vld [vmem:[%s462_s2 + $0x10] sm:$0xff] }
  0x15   : > { %225 = vmatpush.msra.mxu1 %v194_v11  ;;  %v166_v29 = vld [vmem:[%s161_s20] sm:$0xff]  ;;  %v184_v31 = vld [vmem:[%s462_s2 + $0x8] sm:$0xff] }
  0x16   : > { %204 = vmatpush.msra.mxu0 %v177_v8  ;;  %v183_v32 = vld [vmem:[%s462_s2] sm:$0xff] }
  0x17   : > { %226 = vmatpush.msra.mxu1 %v193_v13 }
  0x18   : > { %205 = vmatpush.msra.mxu0 %v176_v10 }
  0x19   : > { %227 = vmatpush.msra.mxu1 %v192_v15 }
  0x1a   : > { %206 = vmatpush.msra.mxu0 %v175_v12 }
  0x1b   : > { %228 = vmatpush.msra.mxu1 %v191_v17 }
  0x1c   : > { %207 = vmatpush.msra.mxu0 %v174_v14 }
  0x1d   : > { %229 = vmatpush.msra.mxu1 %v190_v19 }
  0x1e   : > { %208 = vmatpush.msra.mxu0 %v173_v16 }
  0x1f   : > { %230 = vmatpush.msra.mxu1 %v189_v21 }
  0x20   : > { %209 = vmatpush.msra.mxu0 %v172_v18 }
  0x21   : > { %231 = vmatpush.msra.mxu1 %v188_v23 }
  0x22   : > { %210 = vmatpush.msra.mxu0 %v171_v20 }
  0x23   : > { %232 = vmatpush.msra.mxu1 %v187_v25 }
  0x24   : > { %211 = vmatpush.msra.mxu0 %v170_v22 }
  0x25   : > { %233 = vmatpush.msra.mxu1 %v186_v27 }
  0x26   : > { %212 = vmatpush.msra.mxu0 %v169_v24 }
  0x27   : > { %234 = vmatpush.msra.mxu1 %v185_v30 }
  0x28   : > { %213 = vmatpush.msra.mxu0 %v168_v26 }
  0x29   : > { %235 = vmatpush.msra.mxu1 %v184_v31 }
  0x2a   : > { %214 = vmatpush.msra.mxu0 %v167_v28 }
  0x2b   : > { %215 = vmatmul.f32.vlgmr.msra.gmra.mxu0 %v166_v29  ;;  %236 = vmatpush.msra.mxu1 %v183_v32 }
  0xa8   : > { %v216_v33 = vpop.f32.mrf.mxu0 }
  0xa9   : > { %v219_v34 = vmul.f32 0.2, %v216_v33 }
  0xab   : > { %v220_v35 = vmax.f32 %v216_v33, %v219_v34 }
  0xad   : > { %237 = vmatmul.f32.vlgmr.msra.gmra.mxu1 %v220_v35 }
 0x12a   : > { %v238_v36 = vpop.f32.mrf.mxu1 }
 0x12b   : > { %241 = vst [vmem:[%s165_s6] sm:$0xff] %v238_v36 }
 0x12c PF: > { %s13_s12 = sadd.s32 1, %s318_s12  }
 0x12d   : > { %p10_p4 = scmp.ge.s32.totalorder %s13_s12, 4  }
 0x12f   :  { %12 = sbr.rel (!%p10_p4) target bundleno = 1 (0x1), region = 62 }

</bundles_post_ra>
